<compile_context>
chip_gen: v6e
topology: v6e:2x2x1
jax: 0.10.0
libtpu: 0.0.40
codegen_flags: <defaults>
</compile_context>

<pallas_src>
import functools

import jax
import jax.numpy as jnp
from jax.experimental import pallas as pl
from jax.experimental.pallas import tpu as pltpu


def _layernorm_kernel(x_ref, a_ref, b_ref, o_ref, *, eps, feat):
    # x_ref: (block_rows, feat)   a_ref/b_ref: (1, feat) already f32
    x = x_ref[...].astype(jnp.float32)

    # One-pass statistics: both cross-lane reductions issue back-to-back on the XLU.
    s1 = jnp.sum(x, axis=-1, keepdims=True)
    s2 = jnp.sum(x * x, axis=-1, keepdims=True)
    inv_feat = jnp.float32(1.0 / feat)
    mean = s1 * inv_feat
    # unbiased variance: (sum(x^2) - feat*mean^2) / (feat - 1)
    var = (s2 - mean * s1) * jnp.float32(1.0 / (feat - 1))
    var = jnp.maximum(var, jnp.float32(0.0))  # guard tiny negative from cancellation
    std = jnp.sqrt(var)

    denom = std + jnp.float32(eps)
    # EUP approx reciprocal (free slot) + one Newton step on tiny (rows,1) vectors
    # to restore full f32 accuracy.
    inv = pl.reciprocal(denom, approx=True)
    inv = inv * (jnp.float32(2.0) - denom * inv)

    a = a_ref[...]
    b = b_ref[...]
    y = (x - mean) * inv * a + b
    o_ref[...] = y.astype(o_ref.dtype)


def _round_up(x, m):
    return ((x + m - 1) // m) * m


def _pick_block_rows(rows, feat, itemsize):
    """Choose a row-tile size that keeps tiles ~1-4 MiB and fits scoped VMEM."""
    # Sublane quantum: 8 rows for 4-byte dtypes, 16 for 2-byte, 32 for 1-byte.
    quantum = max(8, 32 // max(1, itemsize))

    try:
        vmem_cap = pltpu.get_tpu_info().vmem_capacity_bytes
    except Exception:
        vmem_cap = 64 << 20  # conservative (v7x-sized) fallback

    # Target tile ≈ vmem/32, clamped to [1 MiB, 4 MiB]:
    #   v5e/v6e (128 MiB) -> 4 MiB tiles, v7x (64 MiB) -> 2 MiB tiles.
    target_tile_bytes = min(max(vmem_cap // 32, 1 << 20), 4 << 20)

    block_rows = max(quantum, target_tile_bytes // (feat * 4))
    block_rows = (block_rows // quantum) * quantum
    # Never use a block taller than the (rounded-up) row count.
    block_rows = min(block_rows, _round_up(rows, quantum))

    # Prefer a grid of length >= 2 so v7x's two TensorCores both get work.
    if rows > block_rows * 0 and (_round_up(rows, block_rows) // block_rows) < 2 \
            and block_rows >= 2 * quantum:
        block_rows = _round_up(block_rows // 2, quantum)

    return block_rows, quantum, vmem_cap


def layer_norm(x, a_2, b_2, eps=1e-6, block_rows=None):
    """x: [..., features]; a_2, b_2: [features]."""
    orig_shape = x.shape
    feat = orig_shape[-1]
    # TODO(synk): feat == 1 gives NaN (ddof=1), identical to the torch reference.
    rows = 1
    for d in orig_shape[:-1]:
        rows *= d

    itemsize = jnp.dtype(x.dtype).itemsize
    auto_block, quantum, vmem_cap = _pick_block_rows(rows, feat, itemsize)
    if block_rows is None:
        block_rows = auto_block
    block_rows = max(quantum, _round_up(block_rows, quantum))

    x2 = x.reshape(rows, feat)
    # Cast the weights once here (block-invariant; constant index_map below keeps
    # them resident instead of re-DMA / re-cast per grid step).
    a2 = a_2.reshape(1, feat).astype(jnp.float32)
    b2 = b_2.reshape(1, feat).astype(jnp.float32)

    # Pad rows up to a multiple of block_rows (padded rows produce finite garbage
    # that is sliced off; eps > 0 keeps the division well defined).
    rows_padded = _round_up(rows, block_rows)
    if rows_padded != rows:
        x2 = jnp.pad(x2, ((0, rows_padded - rows), (0, 0)))

    grid = (rows_padded // block_rows,)

    # VMEM budget: double-buffered in + out tiles, f32 compute temporaries,
    # params, plus headroom.  Clamp to 3/4 of physical VMEM.
    tile_io_bytes = block_rows * feat * itemsize
    tile_f32_bytes = block_rows * feat * 4
    vmem_needed = 4 * tile_io_bytes + 2 * tile_f32_bytes + 4 * feat * 4 + (4 << 20)
    vmem_limit = int(min(vmem_cap * 3 // 4, max(vmem_needed, 32 << 20)))

    kernel = functools.partial(_layernorm_kernel, eps=eps, feat=feat)
    out = pl.pallas_call(
        kernel,
        out_shape=jax.ShapeDtypeStruct((rows_padded, feat), x.dtype),
        grid_spec=pltpu.PrefetchScalarGridSpec(
            num_scalar_prefetch=0,
            grid=grid,
            in_specs=[
                pl.BlockSpec((block_rows, feat), lambda i: (i, 0)),
                pl.BlockSpec((1, feat), lambda i: (0, 0)),
                pl.BlockSpec((1, feat), lambda i: (0, 0)),
            ],
            out_specs=pl.BlockSpec((block_rows, feat), lambda i: (i, 0)),
        ),
        compiler_params=pltpu.CompilerParams(
            dimension_semantics=("parallel",),
            vmem_limit_bytes=vmem_limit,
        ),
    )(x2, a2, b2)

    if rows_padded != rows:
        out = out[:rows]
    return out.reshape(orig_shape)


def _reference(x, a_2, b_2, eps=1e-6):
    x32 = x.astype(jnp.float32)
    mean = jnp.mean(x32, axis=-1, keepdims=True)
    # unbiased std to match torch.Tensor.std()
    std = jnp.sqrt(jnp.var(x32, axis=-1, keepdims=True, ddof=1))
    return (a_2 * (x32 - mean) / (std + eps) + b_2).astype(x.dtype)


if __name__ == "__main__":
    key = jax.random.PRNGKey(0)
    batch, seq, features = 2, 8, 32

    # Deterministic parameter init matching nn.Parameter(torch.ones/zeros(features))
    a_2 = jnp.ones((features,), dtype=jnp.float32)
    b_2 = jnp.zeros((features,), dtype=jnp.float32)

    x = jax.random.normal(key, (batch, seq, features), dtype=jnp.float32)

    out = layer_norm(x, a_2, b_2, eps=1e-6)
    out = jax.block_until_ready(out)

    ref = _reference(x, a_2, b_2, eps=1e-6)
    assert out.shape == x.shape
    assert jnp.allclose(out, ref, atol=1e-4, rtol=1e-4), "mismatch vs reference"

    print("KERNEL_OK")
</pallas_src>

<mosaic_0001>
module attributes {stable_mosaic.version = 11 : i64} {
  func.func @_layernorm_kernel(%arg0: i32, %arg1: memref<8x32xf32, #tpu.memory_space<vmem>>, %arg2: memref<1x32xf32, #tpu.memory_space<vmem>>, %arg3: memref<1x32xf32, #tpu.memory_space<vmem>>, %arg4: memref<8x32xf32, #tpu.memory_space<vmem>>) attributes {dimension_semantics = [#tpu.dimension_semantics<parallel>], iteration_bounds = array<i64: 2>, scalar_prefetch = 0 : i64, scratch_operands = 0 : i64, tpu.core_type = #tpu.core_type<tc>, window_params = [{transform_indices = @transform_0, window_bounds = array<i64: 8, 32>}, {pipeline_mode = #tpu.pipeline_mode<synchronous>, transform_indices = @transform_1, window_bounds = array<i64: 1, 32>}, {pipeline_mode = #tpu.pipeline_mode<synchronous>, transform_indices = @transform_2, window_bounds = array<i64: 1, 32>}, {transform_indices = @transform_3, window_bounds = array<i64: 8, 32>}]} {
    %c0 = arith.constant 0 : index
    %c0_0 = arith.constant 0 : index
    %0 = vector.load %arg1[%c0, %c0_0] : memref<8x32xf32, #tpu.memory_space<vmem>>, vector<8x32xf32>
    %cst = arith.constant dense<0.000000e+00> : vector<8xf32>
    %1 = vector.multi_reduction <add>, %0, %cst [1] : vector<8x32xf32> to vector<8xf32>
    %2 = vector.shape_cast %1 : vector<8xf32> to vector<8x1xf32>
    %3 = arith.mulf %0, %0 : vector<8x32xf32>
    %cst_1 = arith.constant dense<0.000000e+00> : vector<8xf32>
    %4 = vector.multi_reduction <add>, %3, %cst_1 [1] : vector<8x32xf32> to vector<8xf32>
    %5 = vector.shape_cast %4 : vector<8xf32> to vector<8x1xf32>
    %cst_2 = arith.constant 3.125000e-02 : f32
    %6 = vector.broadcast %cst_2 : f32 to vector<8x1xf32>
    %7 = arith.mulf %2, %6 : vector<8x1xf32>
    %8 = arith.mulf %7, %2 : vector<8x1xf32>
    %9 = arith.subf %5, %8 : vector<8x1xf32>
    %cst_3 = arith.constant 0.0322580636 : f32
    %10 = vector.broadcast %cst_3 : f32 to vector<8x1xf32>
    %11 = arith.mulf %9, %10 : vector<8x1xf32>
    %cst_4 = arith.constant 0.000000e+00 : f32
    %12 = vector.broadcast %cst_4 : f32 to vector<8x1xf32>
    %13 = arith.maximumf %11, %12 : vector<8x1xf32>
    %14 = math.sqrt %13 : vector<8x1xf32>
    %cst_5 = arith.constant 9.99999997E-7 : f32
    %15 = vector.broadcast %cst_5 : f32 to vector<8x1xf32>
    %16 = arith.addf %14, %15 : vector<8x1xf32>
    %17 = tpu.reciprocal %16 {approx = true} : vector<8x1xf32> -> vector<8x1xf32>
    %18 = arith.mulf %16, %17 : vector<8x1xf32>
    %cst_6 = arith.constant 2.000000e+00 : f32
    %19 = vector.broadcast %cst_6 : f32 to vector<8x1xf32>
    %20 = arith.subf %19, %18 : vector<8x1xf32>
    %21 = arith.mulf %17, %20 : vector<8x1xf32>
    %c0_7 = arith.constant 0 : index
    %c0_8 = arith.constant 0 : index
    %22 = vector.load %arg2[%c0_7, %c0_8] : memref<1x32xf32, #tpu.memory_space<vmem>>, vector<1x32xf32>
    %c0_9 = arith.constant 0 : index
    %c0_10 = arith.constant 0 : index
    %23 = vector.load %arg3[%c0_9, %c0_10] : memref<1x32xf32, #tpu.memory_space<vmem>>, vector<1x32xf32>
    %24 = vector.broadcast %7 : vector<8x1xf32> to vector<8x32xf32>
    %25 = arith.subf %0, %24 : vector<8x32xf32>
    %26 = vector.broadcast %21 : vector<8x1xf32> to vector<8x32xf32>
    %27 = arith.mulf %25, %26 : vector<8x32xf32>
    %28 = vector.broadcast %22 : vector<1x32xf32> to vector<8x32xf32>
    %29 = arith.mulf %27, %28 : vector<8x32xf32>
    %30 = vector.broadcast %23 : vector<1x32xf32> to vector<8x32xf32>
    %31 = arith.addf %29, %30 : vector<8x32xf32>
    %c0_11 = arith.constant 0 : index
    %c0_12 = arith.constant 0 : index
    %32 = vector.load %arg4[%c0_11, %c0_12] : memref<8x32xf32, #tpu.memory_space<vmem>>, vector<8x32xf32>
    tpu.vector_store %arg4[%c0_11, %c0_12], %31 {strides = array<i32>} : memref<8x32xf32, #tpu.memory_space<vmem>>, vector<8x32xf32>,
    return
  }
  func.func @transform_0(%arg0: i32) -> (i32, i32) {
    %c0_i32 = arith.constant 0 : i32
    %c0_i32_0 = arith.constant 0 : i32
    return %arg0, %c0_i32 : i32, i32
  }
  func.func @transform_1(%arg0: i32) -> (i32, i32) {
    %c0_i32 = arith.constant 0 : i32
    %c0_i32_0 = arith.constant 0 : i32
    %c0_i32_1 = arith.constant 0 : i32
    return %c0_i32, %c0_i32_0 : i32, i32
  }
  func.func @transform_2(%arg0: i32) -> (i32, i32) {
    %c0_i32 = arith.constant 0 : i32
    %c0_i32_0 = arith.constant 0 : i32
    %c0_i32_1 = arith.constant 0 : i32
    return %c0_i32, %c0_i32_0 : i32, i32
  }
  func.func @transform_3(%arg0: i32) -> (i32, i32) {
    %c0_i32 = arith.constant 0 : i32
    %c0_i32_0 = arith.constant 0 : i32
    return %arg0, %c0_i32 : i32, i32
  }
}

</mosaic_0001>

<bundles_post_ra>
// kernel: tpu_custom_call.1
= control target key start
LH: loop header
LB: loop body
LE: loop exit
PB: predicated region body
PF: predicated region fallthrough
CT: control target
= control target key end

     0   :  { %8 = vsyncpa [#allocation3], 0  ;;  %s649_s0 = inlined_call_operand.hbm [shape: f32[16,32], index: 0, kind: input, shape index: {}]   ;;  %s650_s1 = inlined_call_operand.vmem [shape: f32[1,32], index: 1, kind: input, shape index: {}]   ;;  %s651_s2 = inlined_call_operand.vmem [shape: f32[1,32], index: 2, kind: input, shape index: {}]   ;;  %s652_s3 = inlined_call_operand.hbm [shape: f32[16,32], index: 3, kind: output, shape index: {}]  }
   0x1   :  { %10 = vsyncpa [#allocation3 + $0x1], 0 }
   0x2   :  { %11 = vsyncpa [#allocation4], 0 }
   0x3   :  { %13 = vsyncpa [#allocation4 + $0x1], 0  ;;  %s495_s12 = smov 0   ;;  %s497_s13 = smov 0  }
   0x4   :  { %s499_s14 = smov 0   ;;  %s501_s15 = smov 0  }
   0x5 LB: > { %s516_s16 = sadd.s32 4294967295, %s471_s15   ;;  %s315_s17 = sadd.s32 4294967294, %s471_s15   ;;  %s471_s15 = sphi %s501_s15, %s669_s15   ;;  %s467_s14 = sphi %s499_s14, %s668_s14   ;;  %s463_s13 = sphi %s497_s13, %s667_s13   ;;  %s459_s12 = sphi %s495_s12, %s666_s12  }
   0x6   : > { %s520_s18 = sadd.s32 1, %s471_s15   ;;  %s26_s19 = sadd.s32 1, %s467_s14 }
   0x7   : > { %s23_s20 = ssub.s32 %s471_s15, %s520_s18  ;;  %p33_p0 = scmp.ne.s32.totalorder %s467_s14, %s463_s13 }
   0x8   : > { %p24_p1 = scmp.eq.s32.totalorder %s23_s20, 0  ;;  %p34_p2 = scmp.eq.s32.totalorder %s471_s15, 0 }
   0x9   : > { %p39_p3 = scmp.ne.s32.totalorder %s463_s13, %s459_s12  ;;  %p40_p4 = scmp.eq.s32.totalorder %s516_s16, 0 }
   0xa   : > { %s532_s21 = scalar_select %p24_p1, %s467_s14, %s26_s19  }
   0xb   : > { %p534_p5 = por %p34_p2, %p33_p0  ;;  %p538_p6 = por %p40_p4, %p39_p3 }
   0xc   : > { %p105_p7 = scmp.eq.s32.totalorder %s516_s16, 1  ;;  %p111_p8 = scmp.eq.s32.totalorder %s315_s17, 1 }
   0xd   : > { %s656_s23 = scalar_select %p538_p6, 1, 0 }
   0xe   : > { %p341_p10 = scmp.lt.s32.totalorder %s471_s15, 2  ;;  %p545_p11 = por %p105_p7, %p33_p0 }
   0xf   : > { %p549_p12 = por %p111_p8, %p39_p3  ;;  %s137_s26 = sand.u32 1, %s467_s14  }
  0x10   : > { %s657_s24 = scalar_select %p545_p11, 1, 0 }
  0x11   : > { %s658_s25 = scalar_select %p549_p12, 1, 0 }
  0x12   : > { %s319_s27 = sshll.u32 %s471_s15, 7  ;;  %s318_s28 = sshll.u32 %s137_s26, 3 }
  0x13   : > { %s558_s4 = scalar_lea.hbm %s649_s0, %s319_s27  ;;  %s141_s5 = scalar_lea.vmem [#allocation2], %s318_s28 }
  0x14   : > { %s148_s6 = sshll.u32 %s141_s5, 4  ;;  %p562_p13 = pnand %p341_p10, %p534_p5  ;;  %s566_s6 = int_to_ptr.vmem [resolvable:$true] %s148_s6 }
  0x15   : > { %s138_s8 = scalar_lea.sflag [#allocation3], %s137_s26  ;;  %s379_s9 = scalar_lea.hbm %s558_s4, 128 }
  0x16   : > { %p380_p2 = scmp.ne.s32.totalorder %s558_s4, %s379_s9  ;;  %p381_p3 = pneg %p562_p13 }
  0x17   : > { %s384_s17 = scalar_lea.hbm %s649_s0, 256  ;;  %p385_p5 = scmp.lt.s32.totalorder %s558_s4, %s649_s0 }
  0x18   : > { %p382_p4 = pnand %p381_p3, %p380_p2  ;;  %p386_p8 = scmp.lt.s32.totalorder %s384_s17, %s379_s9 }
  0x1a   : > { %p383_p7 = pneg %p382_p4  ;;  %p387_p10 = por %p386_p8, %p385_p5 }
  0x1c   : > { %p388_p9 = pnand %p387_p10, %p383_p7 }
  0x1e   : > { %391 = shalt.err (!%p388_p9)
}
  0x1f   : > { %s392_s22 = scalar_lea.vmem %s566_s6, 128  ;;  %s473_s26 = smov [#allocation2]  }
  0x20   : > { %p393_p0 = scmp.ne.s32.totalorder %s566_s6, %s392_s22  ;;  %s397_s27 = sshll.u32 %s473_s26, 4  ;;  %s398_s27 = int_to_ptr.vmem [resolvable:$false] %s397_s27 }
  0x21   : > { %s399_s28 = scalar_lea.vmem %s398_s27, 256  ;;  %p400_p4 = scmp.lt.s32.totalorder %s566_s6, %s398_s27 }
  0x22   : > { %p395_p1 = pnand %p393_p0, %p381_p3  ;;  %p401_p12 = scmp.lt.s32.totalorder %s399_s28, %s392_s22 }
  0x24   : > { %p396_p2 = pneg %p395_p1  ;;  %p402_p11 = por %p401_p12, %p400_p4 }
  0x26   : > { %p403_p6 = pnand %p402_p11, %p396_p2 }
  0x28   : > { %406 = shalt.err (!%p403_p6)
}
  0x29   : > { %336 = dma.hbm_to_vmem [thread:$0]  (!%p562_p13), %s558_s4, 128, %s566_s6, %s138_s8  }
  0x2a   : > { %p660_p9 = scmp.lt.s32.totalorder %s471_s15, 3  ;;  %p661_p7 = scmp.ge.s32.totalorder %s471_s15, 1 }
  0x2c   : > { %p154_p0 = pnand %p661_p7, %p660_p9 }
  0x2d   : > { %s593_s29 = sand.u32 (!%p154_p0), 1, %s463_s13   ;;  %p662_p6 = scmp.ne.s32.totalorder (!%p154_p0), %s656_s23, 0 }
  0x2e   : > { %157 = sbr.rel (%p154_p0) target bundleno = 261 (0x105), region = 32  ;;  %s321_s30 = sshll.u32 (!%p154_p0), %s593_s29, 3 }
  0x2f   : > { %s160_s5 = scalar_lea.sflag (!%p154_p0), [#allocation3], %s593_s29  ;;  %s163_s7 = scalar_lea.vmem (!%p154_p0), [#allocation2], %s321_s30 }
  0x33   : > { %450 = dma.done.wait (%p662_p6), %s160_s5, 128  }
  0x34   : > { %452 = vsyncadd (%p662_p6), %s160_s5, 4294967168  ;;  %vm187_vm0 = vcmask 261120   ;;  %v186_v0 = vld [vmem:[%s163_s7] sm:$0xff]  ;;  %s326_s9 = sshll.u32 %s516_s16, 7  ;;  %s185_s10 = scalar_lea.vmem [#allocation5], %s321_s30 }
  0x35   : > { %v188_v1 = vsel %vm187_vm0, %v186_v0, 0.0  ;;  %v191_v2 = vmul.f32 %v186_v0, %v186_v0  ;;  %v323_v22 = vld [vmem:[%s650_s1] ss:$0 sm:$0xff]  ;;  %s245_s11 = sshll.u32 %s185_s10, 4  ;;  %s243_s20 = scalar_lea.hbm %s652_s3, %s326_s9  ;;  %s246_s11 = int_to_ptr.vmem [resolvable:$true] %s245_s11 }
  0x36   : > { %189 = vadd.xlane.f32.xlu0 %v188_v1  ;;  %v324_v24 = vld [vmem:[%s651_s2] ss:$0 sm:$0xff]  ;;  %s232_s22 = scalar_lea.sflag [#allocation4], %s593_s29  ;;  %s407_s26 = scalar_lea.vmem %s246_s11, 128 }
  0x37   : > { %v192_v3 = vsel %vm187_vm0, %v191_v2, 0.0  ;;  %p408_p11 = scmp.ne.s32.totalorder %s246_s11, %s407_s26  ;;  %p663_p12 = scmp.ne.s32.totalorder %s657_s24, 0 }
  0x38   : > { %s474_s27 = smov [#allocation5]  }
  0x39   : > { %p409_p13 = pnand %p408_p11, %p663_p12  ;;  %s411_s16 = sshll.u32 %s474_s27, 4  ;;  %s412_s16 = int_to_ptr.vmem [resolvable:$false] %s411_s16 }
  0x3a   : > { %193 = vadd.xlane.f32.xlu0 %v192_v3  ;;  %s413_s28 = scalar_lea.vmem %s412_s16, 256  ;;  %p414_p3 = scmp.lt.s32.totalorder %s246_s11, %s412_s16 }
  0x3b   : > { %p410_p1 = pneg %p409_p13  ;;  %p415_p5 = scmp.lt.s32.totalorder %s413_s28, %s407_s26 }
  0x3d   : > { %p416_p8 = por %p415_p5, %p414_p3 }
  0x3f   : > { %p417_p10 = pnand %p416_p8, %p410_p1 }
  0xbf   : > { %v190_v4 = vpop.xlane.xlu0 %189 }
  0xc0   : > { %v195_v5 = vmul.f32 0.03125, %v190_v4 }
  0xc2   : > { %v196_v6 = vmul.f32 %v195_v5, %v190_v4  ;;  %v214_v20 = vsub.f32 %v186_v0, %v195_v5 }
  0xc3   : > { %v194_v7 = vpop.xlane.xlu0 %193 }
  0xc4   : > { %v197_v8 = vsub.f32 %v194_v7, %v196_v6 }
  0xc6   : > { %v198_v9 = vmul.f32 0.032258064, %v197_v8 }
  0xc8   : > { %v199_v10 = vmax.f32 %v198_v9, 0.0 }
  0xca   : > { %375 = vrsqrt.f32 %v199_v10  ;;  %vm202_vm1 = vcmp.eq.f32.partialorder %v199_v10, inf  ;;  %v205_v13 = vand.u32 2147483648, %v199_v10  ;;  %vm204_vm2 = vcmp.eq.f32.partialorder %v199_v10, 0.0 }
  0xd7   : > { %v376_v11 = vpop.eup %375 }
  0xd8   : > { %v201_v12 = vmul.f32 %v376_v11, %v199_v10 }
  0xda   : > { %v203_v14 = vsel %vm202_vm1, %v199_v10, %v201_v12 }
  0xdb   : > { %v206_v15 = vsel %vm204_vm2, %v205_v13, %v203_v14 }
  0xdc   : > { %v207_v16 = vadd.f32 1e-06, %v206_v15 }
  0xde   : > { %377 = vrcp.f32 %v207_v16 }
  0xeb   : > { %v378_v17 = vpop.eup %377 }
  0xec   : > { %v209_v18 = vmul.f32 %v378_v17, %v207_v16 }
  0xee   : > { %v210_v19 = vsub.f32 2.0, %v209_v18 }
  0xf0   : > { %v211_v21 = vmul.f32 %v378_v17, %v210_v19 }
  0xf2   : > { %v215_v23 = vmul.f32 %v214_v20, %v211_v21 }
  0xf4   : > { %v222_v25 = vmul.f32 %v323_v22, %v215_v23 }
  0xf6   : > { %v229_v26 = vadd.f32 %v324_v24, %v222_v25 }
  0xf8   : > { %230 = vst.msk [vmem:[%s185_s10] sm:$0xff] %vm187_vm0, %v229_v26 }
  0xf9   : > { %420 = shalt.err (!%p417_p10)
}
  0xfa   : > { %s421_s30 = scalar_lea.hbm %s243_s20, 128  ;;  %s425_s7 = scalar_lea.hbm %s652_s3, 256 }
  0xfb   : > { %p422_p2 = scmp.ne.s32.totalorder %s243_s20, %s421_s30  ;;  %p426_p7 = scmp.lt.s32.totalorder %s243_s20, %s652_s3 }
  0xfc   : > { %p427_p0 = scmp.lt.s32.totalorder %s425_s7, %s421_s30 }
  0xfd   : > { %p423_p4 = pnand %p422_p2, %p663_p12 }
  0xfe   : > { %p428_p6 = por %p427_p0, %p426_p7 }
  0xff   : > { %p424_p9 = pneg %p423_p4 }
 0x101   : > { %p429_p11 = pnand %p428_p6, %p424_p9 }
 0x103   : > { %432 = shalt.err (!%p429_p11)
}
 0x104   : > { %331 = dma.vmem_to_hbm [thread:$0]  (%p663_p12), %s246_s11, 128, %s243_s20, %s232_s22  }
 0x105 PF: > { %s257_s6 = sand.u32 1, %s459_s12   ;;  %p664_p13 = scmp.ne.s32.totalorder %s658_s25, 0 }
 0x106   : > { %p665_p1 = scmp.ge.s32.totalorder %s471_s15, 2  ;;  %s258_s8 = scalar_lea.sflag [#allocation4], %s257_s6 }
 0x108   : > { %p338_p3 = pnand %p665_p1, %p664_p13 }
 0x10a   : > { %p339_p5 = pneg %p338_p3 }
 0x10c   : > { %454 = dma.done.wait (%p339_p5), %s258_s8, 128  }
 0x10d   : > { %456 = vsyncadd (%p339_p5), %s258_s8, 4294967168  ;;  %p16_p8 = scmp.ge.s32.totalorder %s520_s18, 4   ;;  %s666_s12 = smov %s463_s13 }
 0x10e   : > { %s667_s13 = smov %s467_s14  ;;  %s668_s14 = smov %s532_s21 }
 0x10f   : > { %s669_s15 = smov %s520_s18  ;;  %18 = sbr.rel (!%p16_p8) target bundleno = 5 (0x5), region = 77 }
 0x114   :  { %263 = vsyncpa [#allocation3], 1 }
 0x115   :  { %265 = vsyncpa [#allocation3 + $0x1], 1 }
 0x116   :  { %266 = vsyncpa [#allocation4], 1 }
 0x117   :  { %268 = vsyncpa [#allocation4 + $0x1], 1 }

</bundles_post_ra>
